<compile_context>
chip_gen: v6e
topology: v6e:2x2x1
jax: 0.10.0
libtpu: 0.0.40
codegen_flags: <defaults>
</compile_context>

<pallas_src>
import jax
import jax.numpy as jnp
from jax.experimental import pallas as pl
from jax.experimental.pallas import tpu as pltpu


def nn1_kernel(x_ref, bn_ref, w1_ref, b1_ref, w2_ref, b2_ref, a_ref, out_ref):
    # --- BatchNorm1d (eval), folded to scale/shift; f32 elementwise ---
    x = x_ref[...]                                       # (TB, F) f32
    xn = x * bn_ref[0:1, :] + bn_ref[1:2, :]

    # --- Dropout(p=0.1): identity in eval.  ReLU. ---
    h = jnp.maximum(xn, 0.0)

    # --- weight_norm Linear 1: bf16 operands, f32 accumulation on the MXU ---
    lin1 = jnp.dot(h.astype(jnp.bfloat16), w1_ref[...],
                   preferred_element_type=jnp.float32) + b1_ref[...]

    # --- batchnorm2(lin1): computed in the reference forward but unused ---
    # --- Dropout(p=0.3): identity in eval ---

    # --- PReLU (single shared scalar parameter, read from SMEM) ---
    a = a_ref[0]
    pre = jnp.maximum(lin1, 0.0) + a * jnp.minimum(lin1, 0.0)

    # --- weight_norm Linear 2 (unpadded (TB, N) output written directly) ---
    out_ref[...] = jnp.dot(pre.astype(jnp.bfloat16), w2_ref[...],
                           preferred_element_type=jnp.float32) + b2_ref[...]


def _pick_block_b(B):
    """Large tiles for throughput, but >=2 grid steps when B allows so the
    two v7x TensorCores both get work.  Always a multiple of 8 (or == B)."""
    if B >= 2048:
        return 1024
    if B >= 1024:
        return 512
    if B >= 512:
        return 256
    if B >= 16:
        return max(8, (pl.cdiv(B, 2) // 8) * 8)
    return B   # tiny batch: single full-batch step (block dim == array dim)


def nn1_forward(x, kp, *, block_b=None):
    """x: (B, F) float32.  kp: dict from fold_params()."""
    B, F = x.shape
    H = kp["w1"].shape[1]
    N = kp["w2"].shape[1]

    if block_b is None:
        block_b = _pick_block_b(B)
    grid = (pl.cdiv(B, block_b),)

    rep = lambda shape: pl.BlockSpec(shape, lambda i: (0, 0))  # grid-invariant

    flops = 2 * B * (F * H + H * N)
    bytes_accessed = (4 * (B * F + B * N + 2 * F + H + N + 1)
                      + 2 * (F * H + H * N))

    out = pl.pallas_call(
        nn1_kernel,
        out_shape=jax.ShapeDtypeStruct((B, N), jnp.float32),
        grid_spec=pltpu.PrefetchScalarGridSpec(
            num_scalar_prefetch=0,
            grid=grid,
            in_specs=[
                pl.BlockSpec((block_b, F), lambda i: (i, 0)),       # x tile
                rep((2, F)),                                        # BN scale/shift
                rep((F, H)),                                        # w1^T (bf16)
                rep((1, H)),                                        # b1
                rep((H, N)),                                        # w2^T (bf16)
                rep((1, N)),                                        # b2
                pl.BlockSpec(memory_space=pltpu.MemorySpace.SMEM),  # prelu a
            ],
            out_specs=pl.BlockSpec((block_b, N), lambda i: (i, 0)),
        ),
        compiler_params=pltpu.CompilerParams(
            dimension_semantics=("parallel",)),
        cost_estimate=pl.CostEstimate(flops=flops, transcendentals=0,
                                      bytes_accessed=bytes_accessed),
    )(x, kp["bn"], kp["w1"], kp["b1"], kp["w2"], kp["b2"], kp["prelu_a"])

    return out


def make_params(key, num_features, num_targets, hidden, eps=1e-5):
    """Deterministic parameters mirroring the PyTorch __init__ (eval mode)."""
    ks = jax.random.split(key, 8)

    # BatchNorm1d(num_features) running stats / affine (perturbed but fixed).
    gamma1 = 1.0 + 0.1 * jax.random.normal(ks[0], (num_features,), jnp.float32)
    beta1 = 0.1 * jax.random.normal(ks[1], (num_features,), jnp.float32)
    mean1 = 0.05 * jax.random.normal(ks[2], (num_features,), jnp.float32)
    var1 = 1.0 + 0.1 * jax.random.uniform(ks[3], (num_features,), jnp.float32)

    # weight_norm Linear(num_features -> hidden): W = g*v/||v||, PyTorch init
    # sets g = ||v|| so W == v at init.
    v1 = 0.1 * jax.random.normal(ks[4], (hidden, num_features), jnp.float32)
    g1 = jnp.linalg.norm(v1, axis=1, keepdims=True)
    w1 = g1 * v1 / jnp.linalg.norm(v1, axis=1, keepdims=True)
    b1 = 0.01 * jax.random.normal(ks[5], (hidden,), jnp.float32)

    prelu_a = jnp.full((1,), 0.25, jnp.float32)   # PReLU default init

    # weight_norm Linear(hidden -> num_targets)
    v2 = 0.1 * jax.random.normal(ks[6], (num_targets, hidden), jnp.float32)
    g2 = jnp.linalg.norm(v2, axis=1, keepdims=True)
    w2 = g2 * v2 / jnp.linalg.norm(v2, axis=1, keepdims=True)
    b2 = 0.01 * jax.random.normal(ks[7], (num_targets,), jnp.float32)

    return dict(gamma1=gamma1, beta1=beta1, mean1=mean1, var1=var1, eps=eps,
                w1=w1, b1=b1, prelu_a=prelu_a, w2=w2, b2=b2)


def fold_params(p):
    """Fold BN -> (scale, shift), transpose weights, cast matmul weights to
    bf16.  No padding (unpadded shapes keep the kernel's HBM traffic minimal).
    Plain JAX, done once outside the kernel."""
    invstd = 1.0 / jnp.sqrt(p["var1"] + p["eps"])
    scale = p["gamma1"] * invstd
    shift = p["beta1"] - p["mean1"] * scale
    bn = jnp.stack([scale, shift], axis=0)                       # (2, F)

    w1 = p["w1"].T.astype(jnp.bfloat16)                          # (F, H)
    w2 = p["w2"].T.astype(jnp.bfloat16)                          # (H, N)
    b1 = p["b1"].reshape(1, -1)                                  # (1, H)
    b2 = p["b2"].reshape(1, -1)                                  # (1, N)

    return dict(bn=bn, w1=w1, b1=b1, w2=w2, b2=b2,
                prelu_a=p["prelu_a"], num_targets=b2.shape[1])


def nn1_reference_folded(x, kp):
    """Pure-JAX reference mirroring the kernel math (same bf16 casts)."""
    xn = x * kp["bn"][0:1, :] + kp["bn"][1:2, :]
    h = jnp.maximum(xn, 0.0)
    lin1 = jnp.dot(h.astype(jnp.bfloat16), kp["w1"],
                   preferred_element_type=jnp.float32) + kp["b1"]
    a = kp["prelu_a"][0]
    pre = jnp.maximum(lin1, 0.0) + a * jnp.minimum(lin1, 0.0)
    return jnp.dot(pre.astype(jnp.bfloat16), kp["w2"],
                   preferred_element_type=jnp.float32) + kp["b2"]


def nn1_reference_f32(x, p):
    """Full-precision eval-mode module reference from the unfolded params."""
    invstd = 1.0 / jnp.sqrt(p["var1"] + p["eps"])
    xn = (x - p["mean1"]) * invstd * p["gamma1"] + p["beta1"]
    h = jnp.maximum(xn, 0.0)
    lin1 = h @ p["w1"].T + p["b1"]
    a = p["prelu_a"][0]
    pre = jnp.maximum(lin1, 0.0) + a * jnp.minimum(lin1, 0.0)
    return pre @ p["w2"].T + p["b2"]


if __name__ == "__main__":
    num_features, hidden, num_targets = 32, 64, 8
    batch = 16

    key = jax.random.PRNGKey(0)
    kx, kparams = jax.random.split(key)
    x = jax.random.normal(kx, (batch, num_features), jnp.float32)

    raw = make_params(kparams, num_features, num_targets, hidden)
    kp = fold_params(raw)

    out = nn1_forward(x, kp)
    out = jax.block_until_ready(out)
    assert out.shape == (batch, num_targets)

    # Exact-path check (same bf16 rounding as the kernel).
    ref = nn1_reference_folded(x, kp)
    assert jnp.allclose(out, ref, atol=1e-3, rtol=1e-3), "mismatch vs folded reference"

    # Module-fidelity check (full f32 eval-mode forward; bf16 matmul tolerance).
    ref_f32 = nn1_reference_f32(x, raw)
    assert jnp.allclose(out, ref_f32, atol=3e-2, rtol=3e-2), "mismatch vs f32 module reference"

    print("KERNEL_OK")
</pallas_src>

<mosaic_0001>
module attributes {stable_mosaic.version = 11 : i64} {
  func.func @nn1_kernel(%arg0: i32, %arg1: memref<8x32xf32, #tpu.memory_space<vmem>>, %arg2: memref<2x32xf32, #tpu.memory_space<vmem>>, %arg3: memref<32x64xbf16, #tpu.memory_space<vmem>>, %arg4: memref<1x64xf32, #tpu.memory_space<vmem>>, %arg5: memref<64x8xbf16, #tpu.memory_space<vmem>>, %arg6: memref<1x8xf32, #tpu.memory_space<vmem>>, %arg7: memref<1xf32, #tpu.memory_space<smem>>, %arg8: memref<8x8xf32, #tpu.memory_space<vmem>>) attributes {dimension_semantics = [#tpu.dimension_semantics<parallel>], iteration_bounds = array<i64: 2>, scalar_prefetch = 0 : i64, scratch_operands = 0 : i64, tpu.core_type = #tpu.core_type<tc>, window_params = [{transform_indices = @transform_0, window_bounds = array<i64: 8, 32>}, {pipeline_mode = #tpu.pipeline_mode<synchronous>, transform_indices = @transform_1, window_bounds = array<i64: 2, 32>}, {pipeline_mode = #tpu.pipeline_mode<synchronous>, transform_indices = @transform_2, window_bounds = array<i64: 32, 64>}, {pipeline_mode = #tpu.pipeline_mode<synchronous>, transform_indices = @transform_3, window_bounds = array<i64: 1, 64>}, {pipeline_mode = #tpu.pipeline_mode<synchronous>, transform_indices = @transform_4, window_bounds = array<i64: 64, 8>}, {pipeline_mode = #tpu.pipeline_mode<synchronous>, transform_indices = @transform_5, window_bounds = array<i64: 1, 8>}, {transform_indices = @transform_6, window_bounds = array<i64: 1>}, {transform_indices = @transform_7, window_bounds = array<i64: 8, 8>}]} {
    %c0 = arith.constant 0 : index
    %c0_0 = arith.constant 0 : index
    %0 = vector.load %arg1[%c0, %c0_0] : memref<8x32xf32, #tpu.memory_space<vmem>>, vector<8x32xf32>
    %c0_1 = arith.constant 0 : index
    %c0_2 = arith.constant 0 : index
    %1 = vector.load %arg2[%c0_1, %c0_2] : memref<2x32xf32, #tpu.memory_space<vmem>>, vector<1x32xf32>
    %2 = vector.broadcast %1 : vector<1x32xf32> to vector<8x32xf32>
    %3 = arith.mulf %0, %2 : vector<8x32xf32>
    %c1 = arith.constant 1 : index
    %c0_3 = arith.constant 0 : index
    %4 = vector.load %arg2[%c1, %c0_3] : memref<2x32xf32, #tpu.memory_space<vmem>>, vector<1x32xf32>
    %5 = vector.broadcast %4 : vector<1x32xf32> to vector<8x32xf32>
    %6 = arith.addf %3, %5 : vector<8x32xf32>
    %cst = arith.constant 0.000000e+00 : f32
    %7 = vector.broadcast %cst : f32 to vector<8x32xf32>
    %8 = arith.maximumf %6, %7 : vector<8x32xf32>
    %9 = arith.truncf %8 : vector<8x32xf32> to vector<8x32xbf16>
    %c0_4 = arith.constant 0 : index
    %c0_5 = arith.constant 0 : index
    %10 = vector.load %arg3[%c0_4, %c0_5] : memref<32x64xbf16, #tpu.memory_space<vmem>>, vector<32x64xbf16>
    %cst_6 = arith.constant dense<0.000000e+00> : vector<8x64xf32>
    %11 = tpu.matmul %9, %10, %cst_6 {dimension_numbers = #tpu.dot_dimension_numbers<[1], [0], [0], [1], [0, 0, 1, 1], [], []>} : vector<8x32xbf16>, vector<32x64xbf16>, vector<8x64xf32> -> vector<8x64xf32>
    %c0_7 = arith.constant 0 : index
    %c0_8 = arith.constant 0 : index
    %12 = vector.load %arg4[%c0_7, %c0_8] : memref<1x64xf32, #tpu.memory_space<vmem>>, vector<1x64xf32>
    %13 = vector.broadcast %12 : vector<1x64xf32> to vector<8x64xf32>
    %14 = arith.addf %11, %13 : vector<8x64xf32>
    %c0_9 = arith.constant 0 : index
    %15 = memref.load %arg7[%c0_9] : memref<1xf32, #tpu.memory_space<smem>>
    %cst_10 = arith.constant 0.000000e+00 : f32
    %16 = vector.broadcast %cst_10 : f32 to vector<8x64xf32>
    %17 = arith.maximumf %14, %16 : vector<8x64xf32>
    %cst_11 = arith.constant 0.000000e+00 : f32
    %18 = vector.broadcast %cst_11 : f32 to vector<8x64xf32>
    %19 = arith.minimumf %14, %18 : vector<8x64xf32>
    %20 = vector.broadcast %15 : f32 to vector<8x64xf32>
    %21 = arith.mulf %20, %19 : vector<8x64xf32>
    %22 = arith.addf %17, %21 : vector<8x64xf32>
    %23 = arith.truncf %22 : vector<8x64xf32> to vector<8x64xbf16>
    %c0_12 = arith.constant 0 : index
    %c0_13 = arith.constant 0 : index
    %24 = vector.load %arg5[%c0_12, %c0_13] : memref<64x8xbf16, #tpu.memory_space<vmem>>, vector<64x8xbf16>
    %cst_14 = arith.constant dense<0.000000e+00> : vector<8x8xf32>
    %25 = tpu.matmul %23, %24, %cst_14 {dimension_numbers = #tpu.dot_dimension_numbers<[1], [0], [0], [1], [0, 0, 1, 1], [], []>} : vector<8x64xbf16>, vector<64x8xbf16>, vector<8x8xf32> -> vector<8x8xf32>
    %c0_15 = arith.constant 0 : index
    %c0_16 = arith.constant 0 : index
    %26 = vector.load %arg6[%c0_15, %c0_16] : memref<1x8xf32, #tpu.memory_space<vmem>>, vector<1x8xf32>
    %27 = vector.broadcast %26 : vector<1x8xf32> to vector<8x8xf32>
    %28 = arith.addf %25, %27 : vector<8x8xf32>
    %c0_17 = arith.constant 0 : index
    %c0_18 = arith.constant 0 : index
    %29 = vector.load %arg8[%c0_17, %c0_18] : memref<8x8xf32, #tpu.memory_space<vmem>>, vector<8x8xf32>
    tpu.vector_store %arg8[%c0_17, %c0_18], %28 {strides = array<i32>} : memref<8x8xf32, #tpu.memory_space<vmem>>, vector<8x8xf32>,
    return
  }
  func.func @transform_0(%arg0: i32) -> (i32, i32) {
    %c0_i32 = arith.constant 0 : i32
    %c0_i32_0 = arith.constant 0 : i32
    return %arg0, %c0_i32 : i32, i32
  }
  func.func @transform_1(%arg0: i32) -> (i32, i32) {
    %c0_i32 = arith.constant 0 : i32
    %c0_i32_0 = arith.constant 0 : i32
    %c0_i32_1 = arith.constant 0 : i32
    return %c0_i32, %c0_i32_0 : i32, i32
  }
  func.func @transform_2(%arg0: i32) -> (i32, i32) {
    %c0_i32 = arith.constant 0 : i32
    %c0_i32_0 = arith.constant 0 : i32
    %c0_i32_1 = arith.constant 0 : i32
    return %c0_i32, %c0_i32_0 : i32, i32
  }
  func.func @transform_3(%arg0: i32) -> (i32, i32) {
    %c0_i32 = arith.constant 0 : i32
    %c0_i32_0 = arith.constant 0 : i32
    %c0_i32_1 = arith.constant 0 : i32
    return %c0_i32, %c0_i32_0 : i32, i32
  }
  func.func @transform_4(%arg0: i32) -> (i32, i32) {
    %c0_i32 = arith.constant 0 : i32
    %c0_i32_0 = arith.constant 0 : i32
    %c0_i32_1 = arith.constant 0 : i32
    return %c0_i32, %c0_i32_0 : i32, i32
  }
  func.func @transform_5(%arg0: i32) -> (i32, i32) {
    %c0_i32 = arith.constant 0 : i32
    %c0_i32_0 = arith.constant 0 : i32
    %c0_i32_1 = arith.constant 0 : i32
    return %c0_i32, %c0_i32_0 : i32, i32
  }
  func.func @transform_6(%arg0: i32) -> i32 {
    %c0_i32 = arith.constant 0 : i32
    %c0_i32_0 = arith.constant 0 : i32
    return %c0_i32 : i32
  }
  func.func @transform_7(%arg0: i32) -> (i32, i32) {
    %c0_i32 = arith.constant 0 : i32
    %c0_i32_0 = arith.constant 0 : i32
    return %arg0, %c0_i32 : i32, i32
  }
}

</mosaic_0001>

<bundles_post_ra>
// kernel: tpu_custom_call.1
= control target key start
LH: loop header
LB: loop body
LE: loop exit
PB: predicated region body
PF: predicated region fallthrough
CT: control target
= control target key end

     0   :  { %s621_s26 = smov 0   ;;  %s675_s0 = inlined_call_operand.vmem [shape: f32[16,32], index: 0, kind: input, shape index: {}]   ;;  %s676_s1 = inlined_call_operand.vmem [shape: f32[2,32], index: 1, kind: input, shape index: {}]   ;;  %s677_s2 = inlined_call_operand.vmem [shape: bf16[32,64], index: 2, kind: input, shape index: {}]   ;;  %s678_s3 = inlined_call_operand.vmem [shape: f32[1,64], index: 3, kind: input, shape index: {}]   ;;  %s679_s4 = inlined_call_operand.vmem [shape: bf16[64,8], index: 4, kind: input, shape index: {}]   ;;  %s680_s5 = inlined_call_operand.vmem [shape: f32[1,8], index: 5, kind: input, shape index: {}]   ;;  %s681_s6 = inlined_call_operand.<no memory space> [shape: f32[1], index: 6, kind: input, shape index: {}]   ;;  %s682_s7 = inlined_call_operand.vmem [shape: f32[16,8], index: 7, kind: output, shape index: {}]  }
   0x1   :  { %12 = sst [smem:[#allocation2]] %s681_s6 }
   0x2 LB: > { %s503_s27 = sadd.s32 4294967295, %s574_s26   ;;  %p507_p0 = scmp.ge.s32.totalorder %s574_s26, 1  ;;  %s574_s26 = sphi %s621_s26, %s18_s26  }
   0x3   : > { %p237_p1 = scmp.lt.s32.totalorder %s574_s26, 3 }
   0x5   : > { %p238_p2 = pnand %p507_p0, %p237_p1 }
   0x6   : > { %p267_p3 = scmp.lt.s32.totalorder (!%p238_p2), %s503_s27, 1  ;;  %s358_s24 = sld [smem:[#allocation2]] (!%p238_p2) }
   0x7   : > { %241 = sbr.rel (%p238_p2) target bundleno = 426 (0x1aa), region = 48 }
   0xc   : > { %v562_v0 = vld [vmem:[%s677_s2 + $0x8] sm:$0xff]   ;;  %v576_v1 = vmov 0.0   ;;  %v563_v2 = vld [vmem:[%s677_s2] sm:$0xff]   ;;  %vm577_vm0 = vmmov 0   ;;  %v564_v3 = vld [vmem:[%s679_s4 + $0x18] sm:$0xff]   ;;  %s684_s27 = smov (!%p267_p3, %s503_s27), 1  ;;  %v361_v17 = vstv %s358_s24 }
   0xd   : > { %532 = vmatprep.subr.bf16.mxu0 %v576_v1  ;;  %540 = vmatprep.subr.bf16.mxu1 %v576_v1  ;;  %v510_v4 = vld [vmem:[%s676_s1] ss:$0 sm:$0xff]  ;;  %s508_s12 = sshll.u32 %s684_s27, 3  ;;  %v511_v6 = vld [vmem:[%s676_s1 + $0x1] ss:$0 sm:$0xff]  ;;  %vm314_vm1 = vcmask 261120  }
   0xe   : > { %533 = vmatpush3.bf16.msra.mxu0 %v562_v0  ;;  %536 = vmatprep.mubr.msk.bf16.mxu0 %vm577_vm0, %v576_v1  ;;  %s270_s15 = scalar_lea.vmem %s675_s0, %s508_s12  ;;  %v565_v11 = vld [vmem:[%s679_s4 + $0x10] sm:$0xff]   ;;  %v566_v12 = vld [vmem:[%s679_s4 + $0x8] sm:$0xff]   ;;  %v567_v13 = vld [vmem:[%s679_s4] sm:$0xff]   ;;  %vm404_vm2 = vcmask 523264   ;;  %s274_s9 = scalar_lea.vmem %s682_s7, %s508_s12  ;;  %vm448_vm3 = vcmask 64512  }
   0xf   : > { %534 = vmatprep.subr.bf16.mxu0 %v576_v1  ;;  %548 = vmatprep.mubr.msk.bf16.mxu1 %vm577_vm0, %v576_v1  ;;  %v276_v5 = vld [vmem:[%s270_s15] sm:$0xff] }
  0x10   : > { %541 = vmatpush3.bf16.msra.mxu1 %v564_v3  ;;  %v282_v7 = vmul.f32 %v510_v4, %v276_v5  ;;  %v512_v14 = vld [vmem:[%s678_s3] ss:$0 sm:$0xff] }
  0x11   : > { %542 = vmatprep.subr.bf16.mxu1 %v576_v1  ;;  %v516_v26 = vld [vmem:[%s680_s5] ss:$0 sm:$0xff] }
  0x12   : > { %535 = vmatpush3.bf16.msra.mxu0 %v563_v2  ;;  %v288_v8 = vadd.f32 %v511_v6, %v282_v7 }
  0x14   : > { %v289_v9 = vmax.f32 %v288_v8, 0.0  ;;  %543 = vmatpush3.bf16.msra.mxu1 %v565_v11 }
  0x15   : > { %544 = vmatprep.subr.bf16.mxu1 %v576_v1 }
  0x16   : > { %v290_v10 = vpack.c.bf16 %v289_v9, %v289_v9 }
  0x18   : > { %537 = vmatmul.mubr.msk.bf16.vlgmr.msra.gmra.mxu0 %vm314_vm1, %v290_v10  ;;  %545 = vmatpush3.bf16.msra.mxu1 %v566_v12 }
  0x19   : > { %546 = vmatprep.subr.bf16.mxu1 %v576_v1 }
  0x1c   : > { %547 = vmatpush3.bf16.msra.mxu1 %v567_v13 }
  0xd8   : > { %v352_v15 = vpop.f32.mrf.mxu0 }
  0xd9   : > { %v353_v16 = vadd.f32 %v512_v14, %v352_v15 }
  0xda   : > { %v538_v18 = vpop.f32.mrf.mxu0 }
  0xdb   : > { %v360_v19 = vmin.f32 %v353_v16, 0.0  ;;  %v359_v21 = vmax.f32 %v353_v16, 0.0 }
  0xdc   : > { %v355_v20 = vpop.f32.mrf.mxu0 }
  0xdd   : > { %v362_v22 = vmul.f32 %v361_v17, %v360_v19 }
  0xde   : > { %v539_v23 = vpop.f32.mrf.mxu0 }
  0xdf   : > { %v363_v24 = vadd.f32 %v362_v22, %v359_v21 }
  0xe1   : > { %v364_v25 = vpack.c.bf16 %v363_v24, %v363_v24 }
  0xe3   : > { %549 = vmatmul.mubr.msk.bf16.vlgmr.msra.gmra.mxu1 %vm404_vm2, %v364_v25 }
 0x1a3   : > { %v442_v27 = vpop.f32.mrf.mxu1 }
 0x1a4   : > { %v443_v28 = vadd.f32 %v516_v26, %v442_v27 }
 0x1a5   : > { %v550_v29 = vpop.f32.mrf.mxu1 }
 0x1a6   : > { %449 = vst.msk [vmem:[%s274_s9] sm:$0xff] %vm448_vm3, %v443_v28 }
 0x1a7   : > { %v445_v30 = vpop.f32.mrf.mxu1 }
 0x1a9   : > { %v551_v31 = vpop.f32.mrf.mxu1 }
 0x1aa PF: > { %s18_s26 = sadd.s32 1, %s574_s26  }
 0x1ab   : > { %p15_p4 = scmp.ge.s32.totalorder %s18_s26, 4  }
 0x1ad   :  { %17 = sbr.rel (!%p15_p4) target bundleno = 2 (0x2), region = 78 }

</bundles_post_ra>
